<compile_context>
chip_gen: v5e
topology: v5e:2x2
jax: 0.10.0
libtpu: 0.0.40
codegen_flags: <defaults>
</compile_context>

<pallas_src>
import functools

import jax
import jax.numpy as jnp
from jax.experimental import pallas as pl
from jax.experimental.pallas import tpu as pltpu


def _dual_gate_fusion_kernel(ho_ref, hi_ref, vo_ref, vi_ref, ct_ref, *,
                             blend_dtype):
    # ho_ref, hi_ref : VMEM (TB, S, H) I/O dtype (f32 or bf16)
    # vo_ref, vi_ref : VMEM (1, 1, H)  I/O dtype, already scaled by 1/T
    # ct_ref         : VMEM (TB, S, H) output dtype
    tb, s, h = ho_ref.shape

    # ---- scores: (h @ v.T) / T  (1/T folded into v by the wrapper) ---------
    # Batched MXU matvec in the native dtype with f32 accumulation -> (TB,S,1).
    # No persistent f32 upcasts of ho/hi, no reshape across sublane tiles.
    vo = jnp.broadcast_to(vo_ref[...], (tb, 1, h))
    vi = jnp.broadcast_to(vi_ref[...], (tb, 1, h))
    so = jnp.einsum('bsh,bnh->bsn', ho_ref[...], vo,
                    preferred_element_type=jnp.float32)
    si = jnp.einsum('bsh,bnh->bsn', hi_ref[...], vi,
                    preferred_element_type=jnp.float32)

    # ---- gate (f32): lambda_o = softmax_S(so) / (softmax_S(so)+softmax_S(si))
    # Numerically stable over the full sequence axis (torch dim=1).
    # Rewritten as eo*Si / (eo*Si + ei*So): one reciprocal instead of 3 divides.
    so = so - jnp.max(so, axis=1, keepdims=True)
    si = si - jnp.max(si, axis=1, keepdims=True)
    eo = jnp.exp(so)
    ei = jnp.exp(si)
    sum_o = jnp.sum(eo, axis=1, keepdims=True)      # (TB, 1, 1), >= 1
    sum_i = jnp.sum(ei, axis=1, keepdims=True)
    num = eo * sum_i
    den = num + ei * sum_o
    # Exact reciprocal (EUP slot; free relative to the HBM DMA bound).
    # NOTE: if eo and ei both underflow to 0 at a position this yields NaN,
    # exactly like the PyTorch reference (0/0).
    lam_o = num * pl.reciprocal(den, approx=False)  # (TB, S, 1) f32

    # ---- blend: ct = hi + lambda_o * (ho - hi) ------------------------------
    # Re-read the tiles (no live f32 copies across the body); blend in
    # blend_dtype (bf16 on v6e/v7x bf16-I/O path, f32 otherwise).
    ho = ho_ref[...].astype(blend_dtype)
    hi = hi_ref[...].astype(blend_dtype)
    lam = lam_o.astype(blend_dtype)
    ct_ref[...] = (hi + lam * (ho - hi)).astype(ct_ref.dtype)


def _chip_version_str():
    try:
        return str(getattr(pltpu.get_tpu_info(), "chip_version", "")).lower()
    except Exception:
        return ""


def _vmem_limit_bytes(chip):
    if "7" in chip:
        return 44 * 1024 * 1024    # v7x: 64 MiB per-TC physical -> headroom
    if "5" in chip or "6" in chip:
        return 96 * 1024 * 1024    # v5e/v6e: 128 MiB physical VMEM
    return 44 * 1024 * 1024        # unknown generation: conservative floor


def _pick_batch_tile(B, S, H, io_itemsize, math_itemsize, vmem_limit):
    budget = (vmem_limit * 3) // 4
    # double-buffered pipeline tiles for ho/hi/ct + elementwise temporaries
    per_batch = (2 * 3 * io_itemsize + 3 * math_itemsize) * S * H
    tb = max(1, budget // per_batch)
    # Keep the DMA pipeline busy: >= 4 grid steps (>= 2 per TC on v7x) when B
    # allows; partial last block is handled by pl.cdiv + masked writeback.
    if B >= 4:
        tb = min(tb, pl.cdiv(B, 4))
    elif B >= 2:
        tb = min(tb, pl.cdiv(B, 2))
    return int(min(tb, B))


def dual_encoder_fusion(ho, hi, v_o, v_i, temperature, out_dtype=None):
    """ho, hi: [B,S,H] (f32 or bf16); v_o, v_i: [1,H]; temperature: [1].

    Returns ct: [B,S,H] (defaults to ho.dtype; pass out_dtype=jnp.bfloat16 to
    emit in the decoder's compute dtype and halve the ct writeback traffic).
    """
    B, S, H = ho.shape
    assert hi.shape == (B, S, H)
    io_dtype = ho.dtype
    out_dtype = io_dtype if out_dtype is None else out_dtype

    chip = _chip_version_str()
    # bf16 blend only on chips with a bf16 VPU (v6e/v7x); f32 math elsewhere.
    is_v5 = "5" in chip
    blend_dtype = (jnp.bfloat16
                   if (io_dtype == jnp.bfloat16 and not is_v5)
                   else jnp.float32)

    # Fold 1/T into the score vectors: (h @ v.T)/T == h @ (v/T).T, then cast to
    # the I/O dtype so the MXU dot runs natively with f32 accumulation.
    vo_eff = (v_o.astype(jnp.float32) /
              temperature.astype(jnp.float32)).reshape(1, 1, H).astype(io_dtype)
    vi_eff = (v_i.astype(jnp.float32) /
              temperature.astype(jnp.float32)).reshape(1, 1, H).astype(io_dtype)

    vmem_limit = _vmem_limit_bytes(chip)
    tb = _pick_batch_tile(B, S, H, jnp.dtype(io_dtype).itemsize,
                          jnp.dtype(blend_dtype).itemsize, vmem_limit)

    kernel = functools.partial(_dual_gate_fusion_kernel, blend_dtype=blend_dtype)

    return pl.pallas_call(
        kernel,
        out_shape=jax.ShapeDtypeStruct((B, S, H), out_dtype),
        grid_spec=pltpu.PrefetchScalarGridSpec(
            num_scalar_prefetch=0,
            grid=(pl.cdiv(B, tb),),          # padded last block if tb ∤ B
            in_specs=[
                pl.BlockSpec((tb, S, H), lambda b: (b, 0, 0)),   # ho
                pl.BlockSpec((tb, S, H), lambda b: (b, 0, 0)),   # hi
                pl.BlockSpec((1, 1, H), lambda b: (0, 0, 0)),    # v_o / T
                pl.BlockSpec((1, 1, H), lambda b: (0, 0, 0)),    # v_i / T
            ],
            out_specs=pl.BlockSpec((tb, S, H), lambda b: (b, 0, 0)),
        ),
        compiler_params=pltpu.CompilerParams(
            dimension_semantics=("parallel",),
            vmem_limit_bytes=vmem_limit,
        ),
    )(ho, hi, vo_eff, vi_eff)


def fusion_reference(ho, hi, v_o, v_i, temperature):
    """Pure-JAX reference matching the PyTorch forward fusion semantics."""
    ho = ho.astype(jnp.float32)
    hi = hi.astype(jnp.float32)
    so = jnp.matmul(ho, v_o.T) / temperature        # (B, S, 1)
    si = jnp.matmul(hi, v_i.T) / temperature
    exp_ao = jax.nn.softmax(so, axis=1)
    exp_ai = jax.nn.softmax(si, axis=1)
    lam_o = exp_ao / (exp_ao + exp_ai)
    return lam_o * ho + (1.0 - lam_o) * hi


if __name__ == "__main__":
    # Small shapes consistent with the module: batch=2, seq lens 10/8
    # (truncated to 8 by the min-seq-len glue), d_model=128.
    B, S_O, S_I, H = 2, 10, 8, 128

    key = jax.random.PRNGKey(0)
    k_ho, k_hi, k_vo, k_vi = jax.random.split(key, 4)

    # TODO(synk): ho/hi are the last_hidden_state of two pretrained T5-large
    # encoder stacks (checkpoint-defined); synthesized as random hidden states.
    ho_full = jax.random.normal(k_ho, (B, S_O, H), dtype=jnp.float32)
    hi_full = jax.random.normal(k_hi, (B, S_I, H), dtype=jnp.float32)

    # Module parameters (shapes from __init__):
    v_o = jax.random.normal(k_vo, (1, H), dtype=jnp.float32)    # nn.Parameter(randn(1, hidden))
    v_i = jax.random.normal(k_vi, (1, H), dtype=jnp.float32)    # nn.Parameter(randn(1, hidden))
    temperature = jnp.ones((1,), dtype=jnp.float32) * 1.5       # nn.Parameter(ones(1) * 1.5)

    # Glue (plain JAX): truncate both encoder outputs to the common length.
    s = min(ho_full.shape[1], hi_full.shape[1])
    ho, hi = ho_full[:, :s, :], hi_full[:, :s, :]

    # --- f32 path ------------------------------------------------------------
    ct = dual_encoder_fusion(ho, hi, v_o, v_i, temperature)
    jax.block_until_ready(ct)
    ct_ref = fusion_reference(ho, hi, v_o, v_i, temperature)
    assert jnp.allclose(ct, ct_ref, atol=1e-3, rtol=1e-3), \
        "f32 fusion mismatch vs reference"

    # --- bf16 I/O path (halves HBM traffic when the T5 stacks run in bf16) ----
    ho_b, hi_b = ho.astype(jnp.bfloat16), hi.astype(jnp.bfloat16)
    ct_b = dual_encoder_fusion(ho_b, hi_b, v_o, v_i, temperature)
    jax.block_until_ready(ct_b)
    assert ct_b.dtype == jnp.bfloat16
    ct_b_ref = fusion_reference(ho_b, hi_b, v_o, v_i, temperature)
    assert jnp.allclose(ct_b.astype(jnp.float32), ct_b_ref, atol=5e-2, rtol=5e-2), \
        "bf16 fusion mismatch vs reference"

    # TODO(synk): the final logits come from the pretrained t5_oa decoder + LM
    # head consuming (ct, decoder_input_ids); that checkpoint-defined
    # transformer stack is out of scope for this kernel.

    print("KERNEL_OK")
</pallas_src>

<mosaic_0001>
module attributes {stable_mosaic.version = 11 : i64} {
  func.func @_dual_gate_fusion_kernel(%arg0: i32, %arg1: memref<1x8x128xf32, #tpu.memory_space<vmem>>, %arg2: memref<1x8x128xf32, #tpu.memory_space<vmem>>, %arg3: memref<1x1x128xf32, #tpu.memory_space<vmem>>, %arg4: memref<1x1x128xf32, #tpu.memory_space<vmem>>, %arg5: memref<1x8x128xf32, #tpu.memory_space<vmem>>) attributes {dimension_semantics = [#tpu.dimension_semantics<parallel>], iteration_bounds = array<i64: 2>, scalar_prefetch = 0 : i64, scratch_operands = 0 : i64, tpu.core_type = #tpu.core_type<tc>, window_params = [{transform_indices = @transform_0, window_bounds = array<i64: 1, 8, 128>}, {transform_indices = @transform_1, window_bounds = array<i64: 1, 8, 128>}, {pipeline_mode = #tpu.pipeline_mode<synchronous>, transform_indices = @transform_2, window_bounds = array<i64: 1, 1, 128>}, {pipeline_mode = #tpu.pipeline_mode<synchronous>, transform_indices = @transform_3, window_bounds = array<i64: 1, 1, 128>}, {transform_indices = @transform_4, window_bounds = array<i64: 1, 8, 128>}]} {
    %c0 = arith.constant 0 : index
    %c0_0 = arith.constant 0 : index
    %c0_1 = arith.constant 0 : index
    %0 = vector.load %arg3[%c0, %c0_0, %c0_1] : memref<1x1x128xf32, #tpu.memory_space<vmem>>, vector<1x1x128xf32>
    %c0_2 = arith.constant 0 : index
    %c0_3 = arith.constant 0 : index
    %c0_4 = arith.constant 0 : index
    %1 = vector.load %arg4[%c0_2, %c0_3, %c0_4] : memref<1x1x128xf32, #tpu.memory_space<vmem>>, vector<1x1x128xf32>
    %c0_5 = arith.constant 0 : index
    %c0_6 = arith.constant 0 : index
    %c0_7 = arith.constant 0 : index
    %2 = vector.load %arg1[%c0_5, %c0_6, %c0_7] : memref<1x8x128xf32, #tpu.memory_space<vmem>>, vector<1x8x128xf32>
    "tpu.trace_start"() <{level = 10 : i32, message = "bsh,bnh->bsn"}> : () -> ()
    %cst = arith.constant dense<0.000000e+00> : vector<1x8x1xf32>
    %3 = tpu.matmul %2, %0, %cst {dimension_numbers = #tpu.dot_dimension_numbers<[2], [2], [1], [1], [0, 0, 0, 1, 1, 1], [0], [0]>} : vector<1x8x128xf32>, vector<1x1x128xf32>, vector<1x8x1xf32> -> vector<1x8x1xf32>
    "tpu.trace_stop"() : () -> ()
    %c0_8 = arith.constant 0 : index
    %c0_9 = arith.constant 0 : index
    %c0_10 = arith.constant 0 : index
    %4 = vector.load %arg2[%c0_8, %c0_9, %c0_10] : memref<1x8x128xf32, #tpu.memory_space<vmem>>, vector<1x8x128xf32>
    "tpu.trace_start"() <{level = 10 : i32, message = "bsh,bnh->bsn"}> : () -> ()
    %cst_11 = arith.constant dense<0.000000e+00> : vector<1x8x1xf32>
    %5 = tpu.matmul %4, %1, %cst_11 {dimension_numbers = #tpu.dot_dimension_numbers<[2], [2], [1], [1], [0, 0, 0, 1, 1, 1], [0], [0]>} : vector<1x8x128xf32>, vector<1x1x128xf32>, vector<1x8x1xf32> -> vector<1x8x1xf32>
    "tpu.trace_stop"() : () -> ()
    %cst_12 = arith.constant dense<0xFF800000> : vector<1x1xf32>
    %6 = vector.multi_reduction <maximumf>, %3, %cst_12 [1] : vector<1x8x1xf32> to vector<1x1xf32>
    %7 = vector.shape_cast %6 : vector<1x1xf32> to vector<1x1x1xf32>
    %8 = vector.broadcast %7 : vector<1x1x1xf32> to vector<1x8x1xf32>
    %9 = arith.subf %3, %8 : vector<1x8x1xf32>
    %cst_13 = arith.constant dense<0xFF800000> : vector<1x1xf32>
    %10 = vector.multi_reduction <maximumf>, %5, %cst_13 [1] : vector<1x8x1xf32> to vector<1x1xf32>
    %11 = vector.shape_cast %10 : vector<1x1xf32> to vector<1x1x1xf32>
    %12 = vector.broadcast %11 : vector<1x1x1xf32> to vector<1x8x1xf32>
    %13 = arith.subf %5, %12 : vector<1x8x1xf32>
    %14 = math.exp %9 : vector<1x8x1xf32>
    %15 = math.exp %13 : vector<1x8x1xf32>
    %cst_14 = arith.constant dense<0.000000e+00> : vector<1x1xf32>
    %16 = vector.multi_reduction <add>, %14, %cst_14 [1] : vector<1x8x1xf32> to vector<1x1xf32>
    %17 = vector.shape_cast %16 : vector<1x1xf32> to vector<1x1x1xf32>
    %cst_15 = arith.constant dense<0.000000e+00> : vector<1x1xf32>
    %18 = vector.multi_reduction <add>, %15, %cst_15 [1] : vector<1x8x1xf32> to vector<1x1xf32>
    %19 = vector.shape_cast %18 : vector<1x1xf32> to vector<1x1x1xf32>
    %20 = vector.broadcast %19 : vector<1x1x1xf32> to vector<1x8x1xf32>
    %21 = arith.mulf %14, %20 : vector<1x8x1xf32>
    %22 = vector.broadcast %17 : vector<1x1x1xf32> to vector<1x8x1xf32>
    %23 = arith.mulf %15, %22 : vector<1x8x1xf32>
    %24 = arith.addf %21, %23 : vector<1x8x1xf32>
    %25 = tpu.reciprocal %24 : vector<1x8x1xf32> -> vector<1x8x1xf32>
    %26 = arith.mulf %21, %25 : vector<1x8x1xf32>
    %c0_16 = arith.constant 0 : index
    %c0_17 = arith.constant 0 : index
    %c0_18 = arith.constant 0 : index
    %27 = vector.load %arg1[%c0_16, %c0_17, %c0_18] : memref<1x8x128xf32, #tpu.memory_space<vmem>>, vector<1x8x128xf32>
    %c0_19 = arith.constant 0 : index
    %c0_20 = arith.constant 0 : index
    %c0_21 = arith.constant 0 : index
    %28 = vector.load %arg2[%c0_19, %c0_20, %c0_21] : memref<1x8x128xf32, #tpu.memory_space<vmem>>, vector<1x8x128xf32>
    %29 = arith.subf %27, %28 : vector<1x8x128xf32>
    %30 = vector.broadcast %26 : vector<1x8x1xf32> to vector<1x8x128xf32>
    %31 = arith.mulf %30, %29 : vector<1x8x128xf32>
    %32 = arith.addf %28, %31 : vector<1x8x128xf32>
    %c0_22 = arith.constant 0 : index
    %c0_23 = arith.constant 0 : index
    %c0_24 = arith.constant 0 : index
    %33 = vector.load %arg5[%c0_22, %c0_23, %c0_24] : memref<1x8x128xf32, #tpu.memory_space<vmem>>, vector<1x8x128xf32>
    tpu.vector_store %arg5[%c0_22, %c0_23, %c0_24], %32 {strides = array<i32>} : memref<1x8x128xf32, #tpu.memory_space<vmem>>, vector<1x8x128xf32>,
    return
  }
  func.func @transform_0(%arg0: i32) -> (i32, i32, i32) {
    %c0_i32 = arith.constant 0 : i32
    %c0_i32_0 = arith.constant 0 : i32
    %c0_i32_1 = arith.constant 0 : i32
    return %arg0, %c0_i32, %c0_i32_0 : i32, i32, i32
  }
  func.func @transform_1(%arg0: i32) -> (i32, i32, i32) {
    %c0_i32 = arith.constant 0 : i32
    %c0_i32_0 = arith.constant 0 : i32
    %c0_i32_1 = arith.constant 0 : i32
    return %arg0, %c0_i32, %c0_i32_0 : i32, i32, i32
  }
  func.func @transform_2(%arg0: i32) -> (i32, i32, i32) {
    %c0_i32 = arith.constant 0 : i32
    %c0_i32_0 = arith.constant 0 : i32
    %c0_i32_1 = arith.constant 0 : i32
    %c0_i32_2 = arith.constant 0 : i32
    return %c0_i32, %c0_i32_0, %c0_i32_1 : i32, i32, i32
  }
  func.func @transform_3(%arg0: i32) -> (i32, i32, i32) {
    %c0_i32 = arith.constant 0 : i32
    %c0_i32_0 = arith.constant 0 : i32
    %c0_i32_1 = arith.constant 0 : i32
    %c0_i32_2 = arith.constant 0 : i32
    return %c0_i32, %c0_i32_0, %c0_i32_1 : i32, i32, i32
  }
  func.func @transform_4(%arg0: i32) -> (i32, i32, i32) {
    %c0_i32 = arith.constant 0 : i32
    %c0_i32_0 = arith.constant 0 : i32
    %c0_i32_1 = arith.constant 0 : i32
    return %arg0, %c0_i32, %c0_i32_0 : i32, i32, i32
  }
}

</mosaic_0001>

<bundles_post_ra>
// kernel: tpu_custom_call.1
= control target key start
LH: loop header
LB: loop body
LE: loop exit
PB: predicated region body
PF: predicated region fallthrough
CT: control target
= control target key end

     0   :  { %s844_s0 = inlined_call_operand.hbm [shape: f32[2,8,128], index: 0, kind: input, shape index: {}]   ;;  %s845_s1 = inlined_call_operand.hbm [shape: f32[2,8,128], index: 1, kind: input, shape index: {}]   ;;  %s846_s2 = inlined_call_operand.vmem [shape: f32[1,1,128], index: 2, kind: input, shape index: {}]   ;;  %s847_s3 = inlined_call_operand.vmem [shape: f32[1,1,128], index: 3, kind: input, shape index: {}]   ;;  %s848_s4 = inlined_call_operand.hbm [shape: f32[2,8,128], index: 4, kind: output, shape index: {}]  }
   0x1   :  { %849 = sst [smem:[#allocation11_spill]] %s844_s0 }
   0x2   :  { %9 = vsyncpa [#allocation3], 0 }
   0x3   :  { %11 = vsyncpa [#allocation3 + $0x1], 0 }
   0x4   :  { %12 = vsyncpa [#allocation6], 0 }
   0x5   :  { %14 = vsyncpa [#allocation6 + $0x1], 0 }
   0x6   :  { %15 = vsyncpa [#allocation4], 0 }
   0x7   :  { %17 = vsyncpa [#allocation4 + $0x1], 0  ;;  %s664_s15 = smov 0   ;;  %s666_s16 = smov 0  }
   0x8   :  { %s668_s17 = smov 0   ;;  %s670_s18 = smov 0  }
   0x9 LB: > { %s685_s19 = sadd.s32 4294967295, %s637_s18   ;;  %s433_s20 = sadd.s32 4294967294, %s637_s18   ;;  %s637_s18 = sphi %s670_s18, %s861_s18   ;;  %s633_s17 = sphi %s668_s17, %s860_s17   ;;  %s629_s16 = sphi %s666_s16, %s859_s16   ;;  %s625_s15 = sphi %s664_s15, %s858_s15  }
   0xa   : > { %s689_s21 = sadd.s32 1, %s637_s18   ;;  %s30_s22 = sadd.s32 1, %s633_s17 }
   0xb   : > { %s27_s23 = ssub.s32 %s637_s18, %s689_s21  ;;  %p37_p0 = scmp.ne.s32.totalorder %s633_s17, %s629_s16 }
   0xc   : > { %p28_p1 = scmp.eq.s32.totalorder %s27_s23, 0  ;;  %p38_p2 = scmp.eq.s32.totalorder %s637_s18, 0 }
   0xd   : > { %p43_p3 = scmp.ne.s32.totalorder %s629_s16, %s625_s15  ;;  %p44_p4 = scmp.eq.s32.totalorder %s685_s19, 0 }
   0xe   : > { %s701_s24 = scalar_select %p28_p1, %s633_s17, %s30_s22  }
   0xf   : > { %p703_p5 = por %p38_p2, %p37_p0  ;;  %p707_p6 = por %p44_p4, %p43_p3 }
  0x10   : > { %p135_p7 = scmp.eq.s32.totalorder %s685_s19, 1  ;;  %p141_p8 = scmp.eq.s32.totalorder %s433_s20, 1 }
  0x11   : > { %p465_p10 = scmp.lt.s32.totalorder %s637_s18, 2  ;;  %s723_s29 = sand.u32 1, %s633_s17  }
  0x12   : > { %p714_p11 = por %p135_p7, %p37_p0  ;;  %p718_p12 = por %p141_p8, %p43_p3 }
  0x13   : > { %s437_s30 = sshll.u32 %s637_s18, 3  ;;  %s436_s5 = sshll.u32 %s723_s29, 3 }
  0x14   : > { %s854_s0 = sld [smem:[#allocation11_spill]]  ;;  %s171_s10 = scalar_lea.vmem [#allocation2], %s436_s5 }
  0x15   : > { %s179_s11 = sshll.u32 %s171_s10, 4  ;;  %p732_p13 = pnand %p465_p10, %p703_p5  ;;  %s180_s11 = int_to_ptr.vmem [resolvable:$true] %s179_s11 }
  0x16   : > { %p440_p0 = scmp.ge.s32.totalorder %s637_s18, 1  ;;  %p203_p1 = scmp.lt.s32.totalorder %s637_s18, 3 }
  0x17   : > { %s168_s13 = scalar_lea.sflag [#allocation3], %s723_s29  ;;  %p511_p3 = pneg %p732_p13 }
  0x1a   : > { %s175_s8 = scalar_lea.hbm %s854_s0, %s437_s30  ;;  %s514_s25 = scalar_lea.hbm %s854_s0, 16 }
  0x1b   : > { %s177_s9 = sshll.u32 %s175_s8, 4  ;;  %s178_s9 = int_to_ptr.hbm [resolvable:$true] %s177_s9 }
  0x1c   : > { %s507_s14 = sshra.s32 %s178_s9, 4  ;;  %s508_s14 = int_to_ptr.hbm [resolvable:$true] %s507_s14 }
  0x1d   : > { %s509_s20 = scalar_lea.hbm %s508_s14, 8  ;;  %p515_p5 = scmp.lt.s32.totalorder %s508_s14, %s854_s0 }
  0x1e   : > { %p510_p2 = scmp.ne.s32.totalorder %s508_s14, %s509_s20  ;;  %p516_p8 = scmp.lt.s32.totalorder %s514_s25, %s509_s20 }
  0x20   : > { %p512_p4 = pnand %p511_p3, %p510_p2  ;;  %p517_p10 = por %p516_p8, %p515_p5 }
  0x22   : > { %p513_p7 = pneg %p512_p4 }
  0x24   : > { %p518_p9 = pnand %p517_p10, %p513_p7 }
  0x26   : > { %521 = shalt.err (!%p518_p9)
}
  0x27   : > { %457 = dma.hbm_to_vmem [thread:$0]  (!%p732_p13), %s178_s9, 128, %s180_s11, %s168_s13  }
  0x28   : > { %p756_p2 = pnand %p440_p0, %p203_p1  ;;  %s194_s14 = scalar_lea.hbm %s845_s1, %s437_s30 }
  0x29   : > { %s196_s20 = sshll.u32 %s194_s14, 4  ;;  %s190_s23 = scalar_lea.vmem [#allocation5], %s436_s5  ;;  %s197_s20 = int_to_ptr.hbm [resolvable:$true] %s196_s20 }
  0x2a   : > { %s198_s25 = sshll.u32 %s190_s23, 4  ;;  %s187_s6 = scalar_lea.sflag [#allocation6], %s723_s29  ;;  %s199_s25 = int_to_ptr.vmem [resolvable:$true] %s198_s25 }
  0x2b   : > { %s537_s7 = sshra.s32 %s197_s20, 4  ;;  %s544_s13 = scalar_lea.hbm %s845_s1, 16  ;;  %s538_s7 = int_to_ptr.hbm [resolvable:$true] %s537_s7 }
  0x2c   : > { %s539_s0 = scalar_lea.hbm %s538_s7, 8  ;;  %p545_p4 = scmp.lt.s32.totalorder %s538_s7, %s845_s1 }
  0x2d   : > { %p540_p9 = scmp.ne.s32.totalorder %s538_s7, %s539_s0  ;;  %p546_p7 = scmp.lt.s32.totalorder %s544_s13, %s539_s0 }
  0x2f   : > { %p542_p0 = pnand %p540_p9, %p511_p3  ;;  %p547_p5 = por %p546_p7, %p545_p4 }
  0x31   : > { %p543_p1 = pneg %p542_p0 }
  0x33   : > { %p548_p8 = pnand %p547_p5, %p543_p1 }
  0x35   : > { %551 = shalt.err (!%p548_p8)
}
  0x36   : > { %460 = dma.hbm_to_vmem [thread:$0]  (!%p732_p13), %s197_s20, 128, %s199_s25, %s187_s6  }
  0x37   : > { %207 = sbr.rel (%p756_p2) target bundleno = 256 (0x100), region = 36  ;;  %s778_s29 = sand.u32 (!%p756_p2), 1, %s629_s16  }
  0x38   : > { %s781_s5 = sshll.u32 (!%p756_p2), %s778_s29, 3  ;;  %s210_s22 = scalar_lea.sflag (!%p756_p2), [#allocation3], %s778_s29 }
  0x39   : > { %s213_s0 = scalar_lea.vmem (!%p756_p2), [#allocation2], %s781_s5 }
  0x3c   : > { %612 = dma.done.wait (%p707_p6), %s210_s22, 128  }
  0x3d   : > { %614 = vsyncadd (%p707_p6), %s210_s22, 4294967168  ;;  %s220_s12 = scalar_lea.sflag [#allocation6], %s778_s29  ;;  %s223_s8 = scalar_lea.vmem [#allocation5], %s781_s5 }
  0x3e   : > { %616 = dma.done.wait (%p707_p6), %s220_s12, 128  }
  0x3f   : > { %618 = vsyncadd (%p707_p6), %s220_s12, 4294967168  ;;  %v795_v0 = vld [vmem:[%s213_s0] sm:$0xff]  ;;  %v804_v4 = vld [vmem:[%s223_s8] sm:$0xff]  ;;  %s445_s26 = sshll.u32 %s685_s19, 3  ;;  %s253_s11 = scalar_lea.vmem [#allocation7], %s781_s5 }
  0x40   : > { %v499_v1 = vld [vmem:[%s846_s2] ss:$0 sm:$0xff]  ;;  %v320_v50 = vsub.f32 %v795_v0, %v804_v4  ;;  %s335_s9 = scalar_lea.hbm %s848_s4, %s445_s26  ;;  %s337_s13 = sshll.u32 %s253_s11, 4  ;;  %s338_s13 = int_to_ptr.vmem [resolvable:$true] %s337_s13 }
  0x41   : > { %v260_v2 = vmul.f32 %v499_v1, %v795_v0  ;;  %v500_v3 = vld [vmem:[%s847_s3] ss:$0 sm:$0xff]  ;;  %s339_s19 = sshll.u32 %s335_s9, 4  ;;  %s325_s10 = scalar_lea.sflag [#allocation4], %s778_s29  ;;  %s340_s19 = int_to_ptr.hbm [resolvable:$true] %s339_s19 }
  0x42   : > { %v267_v5 = vmul.f32 %v500_v3, %v804_v4  ;;  %s581_s30 = sshra.s32 %s340_s19, 4  ;;  %s587_s5 = scalar_lea.hbm %s848_s4, 16  ;;  %s582_s30 = int_to_ptr.hbm [resolvable:$true] %s581_s30 }
  0x43   : > { %261 = vadd.xlane.f32.xlu0 %v260_v2  ;;  %s583_s22 = scalar_lea.hbm %s582_s30, 8  ;;  %p588_p10 = scmp.lt.s32.totalorder %s582_s30, %s848_s4 }
  0x44   : > { %p584_p6 = scmp.ne.s32.totalorder %s582_s30, %s583_s22  ;;  %p589_p2 = scmp.lt.s32.totalorder %s587_s5, %s583_s22 }
  0x46   : > { %p585_p13 = pnand %p584_p6, %p714_p11  ;;  %p590_p9 = por %p589_p2, %p588_p10 }
  0x48   : > { %p586_p3 = pneg %p585_p13 }
  0x4a   : > { %p591_p0 = pnand %p590_p9, %p586_p3 }
  0x4b   : > { %268 = vadd.xlane.f32.xlu0 %v267_v5 }
  0xb6   : > { %v262_v6 = vpop.xlane.xlu0 %261 }
  0xb7   : > { %v270_v7 = vrot.slane %v262_v6, 4 }
  0xb9   : > { %v271_v8 = vmax.f32 %v262_v6, %v270_v7 }
  0xbb   : > { %v272_v9 = vrot.slane %v271_v8, 2 }
  0xbd   : > { %v273_v10 = vmax.f32 %v271_v8, %v272_v9 }
  0xbe   : > { %v269_v11 = vpop.xlane.xlu0 %268 }
  0xbf   : > { %v274_v12 = vrot.slane %v273_v10, 1  ;;  %v277_v13 = vrot.slane %v269_v11, 4 }
  0xc1   : > { %v275_v14 = vmax.f32 %v273_v10, %v274_v12  ;;  %v278_v15 = vmax.f32 %v269_v11, %v277_v13 }
  0xc3   : > { %v276_v16 = vsub.f32 %v262_v6, %v275_v14  ;;  %v279_v17 = vrot.slane %v278_v15, 2 }
  0xc5   : > { %v284_v18 = vmul.f32 1.442695, %v276_v16  ;;  %v280_v19 = vmax.f32 %v278_v15, %v279_v17 }
  0xc7   : > { %501 = vpow2.f32 %v284_v18  ;;  %v281_v20 = vrot.slane %v280_v19, 1 }
  0xc9   : > { %v282_v21 = vmax.f32 %v280_v19, %v281_v20 }
  0xcb   : > { %v283_v22 = vsub.f32 %v269_v11, %v282_v21 }
  0xcd   : > { %v502_v23 = vpop.eup %501  ;;  %v286_v24 = vmul.f32 1.442695, %v283_v22 }
  0xce   : > { %v288_v25 = vrot.slane %v502_v23, 4 }
  0xcf   : > { %503 = vpow2.f32 %v286_v24 }
  0xd0   : > { %v289_v26 = vadd.f32 %v502_v23, %v288_v25 }
  0xd2   : > { %v290_v27 = vrot.slane %v289_v26, 2 }
  0xd4   : > { %v291_v29 = vadd.f32 %v290_v27, %v289_v26 }
  0xd5   : > { %v504_v28 = vpop.eup %503 }
  0xd6   : > { %v294_v30 = vrot.slane %v504_v28, 4  ;;  %v292_v32 = vrot.slane %v291_v29, 1 }
  0xd8   : > { %v295_v31 = vadd.f32 %v504_v28, %v294_v30  ;;  %v293_v35 = vadd.f32 %v292_v32, %v291_v29 }
  0xda   : > { %v296_v33 = vrot.slane %v295_v31, 2  ;;  %v301_v38 = vmul.f32 %v504_v28, %v293_v35 }
  0xdc   : > { %v297_v34 = vadd.f32 %v296_v33, %v295_v31 }
  0xde   : > { %v298_v36 = vrot.slane %v297_v34, 1 }
  0xe0   : > { %v299_v37 = vadd.f32 %v298_v36, %v297_v34 }
  0xe2   : > { %v300_v39 = vmul.f32 %v502_v23, %v299_v37 }
  0xe4   : > { %v302_v40 = vadd.f32 %v301_v38, %v300_v39 }
  0xe6   : > { %505 = vrcp.f32 %v302_v40  ;;  %v314_v44 = vand.u32 2147483648, %v302_v40  ;;  %v312_v46 = vand.u32 2147483647, %v302_v40  ;;  %vm308_vm1 = vweird.f32 %v302_v40 }
  0xe8   : > { %v315_v48 = vor.u32 1.1754944e-38, %v314_v44  ;;  %vm313_vm3 = vcmp.eq.f32.partialorder %v312_v46, 8.507059e+37 }
  0xec   : > { %v506_v41 = vpop.eup %505 }
  0xed   : > { %v304_v42 = vmul.f32 %v506_v41, %v302_v40  ;;  %vm309_vm0 = vweird.f32 %v506_v41 }
  0xee   : > { %vm310_vm2 = vmor %vm308_vm1, %vm309_vm0 }
  0xef   : > { %v305_v43 = vsub.f32 1.0, %v304_v42 }
  0xf1   : > { %v306_v45 = vmul.f32 %v506_v41, %v305_v43 }
  0xf3   : > { %v307_v47 = vadd.f32 %v506_v41, %v306_v45 }
  0xf5   : > { %v311_v49 = vsel %vm310_vm2, %v506_v41, %v307_v47 }
  0xf6   : > { %v316_v51 = vsel %vm313_vm3, %v315_v48, %v311_v49 }
  0xf7   : > { %v317_v52 = vmul.f32 %v316_v51, %v300_v39 }
  0xf9   : > { %v321_v53 = vmul.f32 %v320_v50, %v317_v52 }
  0xfb   : > { %v322_v54 = vadd.f32 %v321_v53, %v804_v4 }
  0xfd   : > { %323 = vst [vmem:[%s253_s11] sm:$0xff] %v322_v54 }
  0xfe   : > { %594 = shalt.err (!%p591_p0)
}
  0xff   : > { %452 = dma.vmem_to_hbm [thread:$0]  (%p714_p11), %s338_s13, 128, %s340_s19, %s325_s10  }
 0x100 PF: > { %s351_s29 = sand.u32 1, %s625_s15   ;;  %p857_p1 = scmp.ge.s32.totalorder %s637_s18, 2 }
 0x101   : > { %s352_s20 = scalar_lea.sflag [#allocation4], %s351_s29 }
 0x102   : > { %p462_p4 = pnand %p857_p1, %p718_p12 }
 0x104   : > { %p463_p7 = pneg %p462_p4 }
 0x106   : > { %620 = dma.done.wait (%p463_p7), %s352_s20, 128  }
 0x107   : > { %622 = vsyncadd (%p463_p7), %s352_s20, 4294967168  ;;  %p20_p5 = scmp.ge.s32.totalorder %s689_s21, 4   ;;  %s858_s15 = smov %s629_s16 }
 0x108   : > { %s859_s16 = smov %s633_s17  ;;  %s860_s17 = smov %s701_s24 }
 0x109   : > { %s861_s18 = smov %s689_s21  ;;  %22 = sbr.rel (!%p20_p5) target bundleno = 9 (0x9), region = 94 }
 0x10e   :  { %358 = vsyncpa [#allocation3], 1 }
 0x10f   :  { %360 = vsyncpa [#allocation3 + $0x1], 1 }
 0x110   :  { %361 = vsyncpa [#allocation6], 1 }
 0x111   :  { %363 = vsyncpa [#allocation6 + $0x1], 1 }
 0x112   :  { %364 = vsyncpa [#allocation4], 1 }
 0x113   :  { %366 = vsyncpa [#allocation4 + $0x1], 1 }

</bundles_post_ra>
